<compile_context>
chip_gen: v6e
topology: v6e:2x2x1
jax: 0.10.0
libtpu: 0.0.40
codegen_flags: <defaults>
</compile_context>

<pallas_src>
import jax
import jax.numpy as jnp
import numpy as np
from jax.experimental import pallas as pl
from jax.experimental.pallas import tpu as pltpu


def _round_up(x, m):
    return (x + m - 1) // m * m


def _encoder_kernel(x_ref, sel_ref, delta_ref, tab_ref, o_ref):
    # x_ref:     (TN, F)        int32 VMEM  raw per-feature indices for this node tile
    # sel_ref:   (F, D_pad)     f32   VMEM  sel[f, d] = 1 iff global row d is in feature f
    # delta_ref: (1, D_pad)     f32   VMEM  delta[d] = d - offsets[feat(d)]; -1 on pad lanes
    # tab_ref:   (D_pad, E_pad) f32   VMEM  concatenated, zero-padded embedding table
    # o_ref:     (TN, E_pad)    f32   VMEM  summed embeddings for this node tile
    idx_f = x_ref[...].astype(jnp.float32)        # exact: indices <= 118 << 2**24
    tn = idx_f.shape[0]
    d_pad, e_pad = tab_ref.shape

    acc = jnp.zeros((tn, e_pad), jnp.float32)
    for lo in range(0, d_pad, 128):               # static; D_pad/128 = 2 for OGB atoms
        # picked[n, d] = idx[n, feat(d)]  -- one tiny MXU matmul, no per-feature loop.
        picked = jnp.dot(idx_f, sel_ref[:, lo:lo + 128],
                         preferred_element_type=jnp.float32)            # (TN, 128)
        # Fires exactly once per (node, feature): idx[n, feat(d)] == d - offsets[feat(d)].
        # Out-of-range indices match no lane and contribute zero.
        one_hot = (picked == delta_ref[:, lo:lo + 128]).astype(jnp.float32)
        # Summed embedding lookup == one_hot @ table-chunk (MXU, f32 accumulation).
        acc = acc + jnp.dot(one_hot, tab_ref[lo:lo + 128, :],
                            preferred_element_type=jnp.float32)
    o_ref[...] = acc


def make_encoder_params(feature_tables):
    """Prepare the module 'parameters' once: padded table + static selector/delta.

    feature_tables: list of per-feature (feature_dims[f], emb_dim) float32 tables.
    """
    dims = [int(t.shape[0]) for t in feature_tables]
    emb_dim = int(feature_tables[0].shape[1])
    vocab = int(sum(dims))
    d_pad = _round_up(max(vocab, 128), 128)
    e_pad = _round_up(max(emb_dim, 128), 128)

    table = jnp.concatenate([t.astype(jnp.float32) for t in feature_tables], axis=0)
    table = jnp.pad(table, ((0, d_pad - vocab), (0, e_pad - emb_dim)))

    offsets = np.concatenate([[0], np.cumsum(dims)[:-1]]).astype(np.int64)
    sel = np.zeros((len(dims), d_pad), np.float32)
    delta = np.full((1, d_pad), -1.0, np.float32)   # -1 never matches an index >= 0
    for f, (off, dim) in enumerate(zip(offsets, dims)):
        sel[f, off:off + dim] = 1.0
        delta[0, off:off + dim] = np.arange(dim, dtype=np.float32)

    return dict(table=table, sel=jnp.asarray(sel), delta=jnp.asarray(delta),
                num_feats=len(dims), emb_dim=emb_dim, vocab=vocab)


def ogb_atom_encoder(x_idx, params, *, node_tile=256, trim_columns=True):
    """Summed multi-feature embedding lookup: sum_f table_f[x_idx[:, f]].

    x_idx:  (N, F) int  per-feature indices (each column within its own vocab range)
    params: output of make_encoder_params
    Returns (N, emb_dim) f32, or the lane-dense (N, E_pad) slab if trim_columns=False
    (the padded columns are exact zeros, so downstream matmuls can consume the slab
    directly and skip the column-slice HBM copy).
    """
    n, f = x_idx.shape
    assert f == params["num_feats"]
    tab, sel, delta = params["table"], params["sel"], params["delta"]
    d_pad, e_pad = tab.shape
    # The dense one-hot @ table trick wastes ~D/F in VPU/MXU passes and VMEM;
    # keep it only for small concatenated vocabularies (OGB atom dims sum to 174).
    # Beyond this, switch to a DMA-gather kernel (memory_space=pl.ANY table).
    assert d_pad <= 1024, "one-hot-matmul path is only intended for small vocabularies"
    assert node_tile % 8 == 0

    # Keep the node grid >= 2 so both TensorCores get tiles on v7x (megacore).
    while node_tile > 128 and pl.cdiv(n, node_tile) < 2:
        node_tile //= 2
    grid = (pl.cdiv(n, node_tile),)   # partial last block; no jnp.pad of x

    x = x_idx.astype(jnp.int32)

    out = pl.pallas_call(
        _encoder_kernel,
        out_shape=jax.ShapeDtypeStruct((n, e_pad), jnp.float32),
        grid_spec=pltpu.PrefetchScalarGridSpec(
            num_scalar_prefetch=0,
            grid=grid,
            in_specs=[
                pl.BlockSpec((node_tile, f), lambda i: (i, 0)),
                # Constant-index (resident) inputs: single-buffer so their VMEM
                # footprint is 1x (matters on v7x's 64 MiB VMEM as D*E grows).
                pl.BlockSpec((f, d_pad), lambda i: (0, 0),
                             pipeline_mode=pl.Buffered(1)),
                pl.BlockSpec((1, d_pad), lambda i: (0, 0),
                             pipeline_mode=pl.Buffered(1)),
                pl.BlockSpec((d_pad, e_pad), lambda i: (0, 0),
                             pipeline_mode=pl.Buffered(1)),
            ],
            out_specs=pl.BlockSpec((node_tile, e_pad), lambda i: (i, 0)),
        ),
        compiler_params=pltpu.CompilerParams(
            dimension_semantics=("parallel",)),
    )(x, sel, delta, tab)

    return out[:, :params["emb_dim"]] if trim_columns else out


def xavier_uniform(key, shape):
    fan_in, fan_out = shape
    a = float(np.sqrt(6.0 / (fan_in + fan_out)))
    return jax.random.uniform(key, shape, jnp.float32, minval=-a, maxval=a)


if __name__ == "__main__":
    # Real OGB atom-feature vocabulary sizes (sum = 174) and an OGB-style emb_dim.
    full_atom_feature_dims = [119, 5, 12, 12, 10, 6, 6, 2, 2]
    emb_dim = 100            # padded to 128 lanes inside the wrapper, sliced back
    num_nodes = 1000         # grid = cdiv(1000, 256) = 4 tiles (last one partial)
    num_feats = len(full_atom_feature_dims)

    key = jax.random.PRNGKey(0)
    keys = jax.random.split(key, 2 * num_feats)

    # Deterministic xavier-uniform init per feature table ("module init", done once).
    tables = [xavier_uniform(keys[i], (full_atom_feature_dims[i], emb_dim))
              for i in range(num_feats)]
    params = make_encoder_params(tables)

    # Deterministic integer feature inputs, each column within its vocab range.
    cols = [jax.random.randint(keys[num_feats + i], (num_nodes, 1), 0,
                               full_atom_feature_dims[i], dtype=jnp.int32)
            for i in range(num_feats)]
    x_idx = jnp.concatenate(cols, axis=1)                             # (N, F) int32

    out = ogb_atom_encoder(x_idx, params, node_tile=256)
    out = jax.block_until_ready(out)
    assert out.shape == (num_nodes, emb_dim)

    # Pure-JAX reference: sum of per-feature embedding lookups.
    ref = jnp.zeros((num_nodes, emb_dim), jnp.float32)
    for i in range(num_feats):
        ref = ref + jnp.take(tables[i], x_idx[:, i], axis=0)

    np.testing.assert_allclose(np.asarray(out), np.asarray(ref),
                               rtol=1e-5, atol=1e-5)
    print("KERNEL_OK")
</pallas_src>

<mosaic_0001>
module attributes {stable_mosaic.version = 11 : i64} {
  func.func @_encoder_kernel(%arg0: i32, %arg1: memref<256x9xi32, #tpu.memory_space<vmem>>, %arg2: memref<9x256xf32, #tpu.memory_space<vmem>>, %arg3: memref<1x256xf32, #tpu.memory_space<vmem>>, %arg4: memref<256x128xf32, #tpu.memory_space<vmem>>, %arg5: memref<256x128xf32, #tpu.memory_space<vmem>>) attributes {dimension_semantics = [#tpu.dimension_semantics<parallel>], iteration_bounds = array<i64: 4>, scalar_prefetch = 0 : i64, scratch_operands = 0 : i64, tpu.core_type = #tpu.core_type<tc>, window_params = [{transform_indices = @transform_0, window_bounds = array<i64: 256, 9>}, {pipeline_mode = #tpu.pipeline_mode<synchronous>, transform_indices = @transform_1, window_bounds = array<i64: 9, 256>}, {pipeline_mode = #tpu.pipeline_mode<synchronous>, transform_indices = @transform_2, window_bounds = array<i64: 1, 256>}, {pipeline_mode = #tpu.pipeline_mode<synchronous>, transform_indices = @transform_3, window_bounds = array<i64: 256, 128>}, {transform_indices = @transform_4, window_bounds = array<i64: 256, 128>}]} {
    %c0 = arith.constant 0 : index
    %c0_0 = arith.constant 0 : index
    %0 = vector.load %arg1[%c0, %c0_0] : memref<256x9xi32, #tpu.memory_space<vmem>>, vector<256x9xi32>
    %1 = arith.sitofp %0 : vector<256x9xi32> to vector<256x9xf32>
    %cst = arith.constant 0.000000e+00 : f32
    %2 = vector.broadcast %cst : f32 to vector<256x128xf32>
    %c0_1 = arith.constant 0 : index
    %c0_2 = arith.constant 0 : index
    %3 = vector.load %arg2[%c0_1, %c0_2] : memref<9x256xf32, #tpu.memory_space<vmem>>, vector<9x128xf32>
    %cst_3 = arith.constant dense<0.000000e+00> : vector<256x128xf32>
    %4 = tpu.matmul %1, %3, %cst_3 {dimension_numbers = #tpu.dot_dimension_numbers<[1], [0], [0], [1], [0, 0, 1, 1], [], []>} : vector<256x9xf32>, vector<9x128xf32>, vector<256x128xf32> -> vector<256x128xf32>
    %c0_4 = arith.constant 0 : index
    %c0_5 = arith.constant 0 : index
    %5 = vector.load %arg3[%c0_4, %c0_5] : memref<1x256xf32, #tpu.memory_space<vmem>>, vector<1x128xf32>
    %6 = vector.broadcast %5 : vector<1x128xf32> to vector<256x128xf32>
    %7 = arith.cmpf oeq, %4, %6 : vector<256x128xf32>
    %8 = arith.extui %7 : vector<256x128xi1> to vector<256x128xi32>
    %9 = arith.sitofp %8 : vector<256x128xi32> to vector<256x128xf32>
    %c0_6 = arith.constant 0 : index
    %c0_7 = arith.constant 0 : index
    %10 = vector.load %arg4[%c0_6, %c0_7] : memref<256x128xf32, #tpu.memory_space<vmem>>, vector<128x128xf32>
    %cst_8 = arith.constant dense<0.000000e+00> : vector<256x128xf32>
    %11 = tpu.matmul %9, %10, %cst_8 {dimension_numbers = #tpu.dot_dimension_numbers<[1], [0], [0], [1], [0, 0, 1, 1], [], []>} : vector<256x128xf32>, vector<128x128xf32>, vector<256x128xf32> -> vector<256x128xf32>
    %12 = arith.addf %2, %11 : vector<256x128xf32>
    %c0_9 = arith.constant 0 : index
    %c128 = arith.constant 128 : index
    %13 = vector.load %arg2[%c0_9, %c128] : memref<9x256xf32, #tpu.memory_space<vmem>>, vector<9x128xf32>
    %cst_10 = arith.constant dense<0.000000e+00> : vector<256x128xf32>
    %14 = tpu.matmul %1, %13, %cst_10 {dimension_numbers = #tpu.dot_dimension_numbers<[1], [0], [0], [1], [0, 0, 1, 1], [], []>} : vector<256x9xf32>, vector<9x128xf32>, vector<256x128xf32> -> vector<256x128xf32>
    %c0_11 = arith.constant 0 : index
    %c128_12 = arith.constant 128 : index
    %15 = vector.load %arg3[%c0_11, %c128_12] : memref<1x256xf32, #tpu.memory_space<vmem>>, vector<1x128xf32>
    %16 = vector.broadcast %15 : vector<1x128xf32> to vector<256x128xf32>
    %17 = arith.cmpf oeq, %14, %16 : vector<256x128xf32>
    %18 = arith.extui %17 : vector<256x128xi1> to vector<256x128xi32>
    %19 = arith.sitofp %18 : vector<256x128xi32> to vector<256x128xf32>
    %c128_13 = arith.constant 128 : index
    %c0_14 = arith.constant 0 : index
    %20 = vector.load %arg4[%c128_13, %c0_14] : memref<256x128xf32, #tpu.memory_space<vmem>>, vector<128x128xf32>
    %cst_15 = arith.constant dense<0.000000e+00> : vector<256x128xf32>
    %21 = tpu.matmul %19, %20, %cst_15 {dimension_numbers = #tpu.dot_dimension_numbers<[1], [0], [0], [1], [0, 0, 1, 1], [], []>} : vector<256x128xf32>, vector<128x128xf32>, vector<256x128xf32> -> vector<256x128xf32>
    %22 = arith.addf %12, %21 : vector<256x128xf32>
    %c0_16 = arith.constant 0 : index
    %c0_17 = arith.constant 0 : index
    %23 = vector.load %arg5[%c0_16, %c0_17] : memref<256x128xf32, #tpu.memory_space<vmem>>, vector<256x128xf32>
    tpu.vector_store %arg5[%c0_16, %c0_17], %22 {strides = array<i32>} : memref<256x128xf32, #tpu.memory_space<vmem>>, vector<256x128xf32>,
    return
  }
  func.func @transform_0(%arg0: i32) -> (i32, i32) {
    %c0_i32 = arith.constant 0 : i32
    %c0_i32_0 = arith.constant 0 : i32
    return %arg0, %c0_i32 : i32, i32
  }
  func.func @transform_1(%arg0: i32) -> (i32, i32) {
    %c0_i32 = arith.constant 0 : i32
    %c0_i32_0 = arith.constant 0 : i32
    %c0_i32_1 = arith.constant 0 : i32
    return %c0_i32, %c0_i32_0 : i32, i32
  }
  func.func @transform_2(%arg0: i32) -> (i32, i32) {
    %c0_i32 = arith.constant 0 : i32
    %c0_i32_0 = arith.constant 0 : i32
    %c0_i32_1 = arith.constant 0 : i32
    return %c0_i32, %c0_i32_0 : i32, i32
  }
  func.func @transform_3(%arg0: i32) -> (i32, i32) {
    %c0_i32 = arith.constant 0 : i32
    %c0_i32_0 = arith.constant 0 : i32
    %c0_i32_1 = arith.constant 0 : i32
    return %c0_i32, %c0_i32_0 : i32, i32
  }
  func.func @transform_4(%arg0: i32) -> (i32, i32) {
    %c0_i32 = arith.constant 0 : i32
    %c0_i32_0 = arith.constant 0 : i32
    return %arg0, %c0_i32 : i32, i32
  }
}

</mosaic_0001>

<bundles_post_ra>
// kernel: tpu_custom_call.1
= control target key start
LH: loop header
LB: loop body
LE: loop exit
PB: predicated region body
PF: predicated region fallthrough
CT: control target
= control target key end

     0   :  { %9 = vsyncpa [#allocation3], 0  ;;  %s2919_s0 = inlined_call_operand.vmem [shape: s32[1000,9], index: 0, kind: input, shape index: {}]   ;;  %s2920_s1 = inlined_call_operand.vmem [shape: f32[9,256], index: 1, kind: input, shape index: {}]   ;;  %s2921_s2 = inlined_call_operand.vmem [shape: f32[1,256], index: 2, kind: input, shape index: {}]   ;;  %s2922_s3 = inlined_call_operand.vmem [shape: f32[256,128], index: 3, kind: input, shape index: {}]   ;;  %s2923_s4 = inlined_call_operand.hbm [shape: f32[1000,128], index: 4, kind: output, shape index: {}]  }
   0x1   :  { %11 = vsyncpa [#allocation3 + $0x1], 0  ;;  %s2420_s15 = smov 0   ;;  %s2422_s16 = smov 0  }
   0x2   :  { %s2424_s17 = smov 0   ;;  %s2426_s18 = smov 0  }
   0x3 LB: > { %s2441_s19 = sadd.s32 4294967295, %s2389_s18   ;;  %s1647_s20 = sadd.s32 4294967294, %s2389_s18   ;;  %s2389_s18 = sphi %s2426_s18, %s2929_s18   ;;  %s2385_s17 = sphi %s2424_s17, %s2928_s17   ;;  %s2381_s16 = sphi %s2422_s16, %s2927_s16   ;;  %s2377_s15 = sphi %s2420_s15, %s2926_s15  }
   0x4   : > { %s2445_s21 = sadd.s32 1, %s2389_s18   ;;  %s113_s22 = sadd.s32 1, %s2385_s17 }
   0x5   : > { %s110_s23 = ssub.s32 %s2389_s18, %s2445_s21  ;;  %p123_p0 = scmp.ne.s32.totalorder %s2385_s17, %s2381_s16 }
   0x6   : > { %p111_p1 = scmp.eq.s32.totalorder %s110_s23, 0  ;;  %p124_p2 = scmp.eq.s32.totalorder %s2441_s19, 3 }
   0x7   : > { %p129_p3 = scmp.ne.s32.totalorder %s2381_s16, %s2377_s15  ;;  %p130_p4 = scmp.eq.s32.totalorder %s1647_s20, 3 }
   0x8   : > { %s2456_s24 = scalar_select %p111_p1, %s2385_s17, %s113_s22  }
   0x9   : > { %p2458_p5 = por %p124_p2, %p123_p0  ;;  %p2462_p6 = por %p130_p4, %p129_p3 }
   0xa   : > { %p1650_p7 = scmp.ge.s32.totalorder %s2389_s18, 1  ;;  %p174_p8 = scmp.lt.s32.totalorder %s2389_s18, 5 }
   0xc   : > { %p175_p9 = pnand %p1650_p7, %p174_p8 }
   0xd   : > { %s2481_s9 = sshll.u32 (!%p175_p9), %s2441_s19, 5  ;;  %s201_s5 = sand.u32 (!%p175_p9), 1, %s2381_s16  }
   0xe   : > { %178 = sbr.rel (%p175_p9) target bundleno = 510 (0x1fe), region = 36  ;;  %p209_p10 = scmp.lt.s32.totalorder (!%p175_p9), %s2481_s9, 124 }
   0xf   : > { %s1651_s6 = sshll.u32 (!%p175_p9), %s201_s5, 8  ;;  %s2859_s8 = scalar_lea.sflag (!%p175_p9), [#allocation3], %s201_s5 }
  0x10   : > { %s2823_s7 = scalar_lea.vmem (!%p175_p9), [#allocation2], %s1651_s6 }
  0x13   : > { %v288_v0 = vld [vmem:[%s2920_s1 + $0x10] sm:$0x1]  ;;  %vm386_vm0 = vcmask 1040384   ;;  %v735_v1 = vld [vmem:[%s2920_s1 + $0x18] sm:$0x1]  ;;  %v287_v2 = vld [vmem:[%s2920_s1] sm:$0xff] }
  0x14   : > { %2024 = vmatprep.subr.msk.mxu0 %vm386_vm0, %v288_v0  ;;  %2076 = vmatprep.subr.msk.mxu1 %vm386_vm0, %v735_v1  ;;  %v734_v3 = vld [vmem:[%s2920_s1 + $0x8] sm:$0xff]  ;;  %v1082_v4 = vld [vmem:[%s2922_s3 + $0xf8] sm:$0xff]  ;;  %s210_s14 = scalar_select %p209_p10, %s2481_s9, 124  ;;  %vm289_vm1 = vcmask 72704   ;;  %v1081_v15 = vld [vmem:[%s2922_s3 + $0xf0] sm:$0xff] }
  0x15   : > { %2025 = vmatpush3.msk.msra.mxu0 %vm386_vm0, %v288_v0  ;;  %2077 = vmatpush3.msk.msra.mxu1 %vm386_vm0, %v735_v1  ;;  %v733_v5 = vld [vmem:[%s2922_s3 + $0x78] sm:$0xff]  ;;  %v732_v16 = vld [vmem:[%s2922_s3 + $0x70] sm:$0xff]  ;;  %v1080_v21 = vld [vmem:[%s2922_s3 + $0xe8] sm:$0xff]  ;;  %s1574_s10 = ssub.s32 (%p2458_p5), 125, %s2481_s9 }
  0x16   : > { %2026 = vmatprep.subr.mxu0 %v287_v2  ;;  %2078 = vmatprep.subr.mxu1 %v734_v3  ;;  %s1653_s20 = sshll.u32 %s210_s14, 3  ;;  %v731_v22 = vld [vmem:[%s2922_s3 + $0x68] sm:$0xff]  ;;  %v1079_v27 = vld [vmem:[%s2922_s3 + $0xe0] sm:$0xff]  ;;  %v1078_v33 = vld [vmem:[%s2922_s3 + $0xd8] sm:$0xff]  ;;  %p1575_p11 = scmp.lt.s32.totalorder (%p2458_p5), %s1574_s10, 32 }
  0x17   : > { %2027 = vmatpush3.msra.mxu0 %v287_v2  ;;  %2079 = vmatpush3.msra.mxu1 %v734_v3  ;;  %s2494_s27 = scalar_lea.vmem %s2919_s0, %s1653_s20  ;;  %v730_v28 = vld [vmem:[%s2922_s3 + $0x60] sm:$0xff]  ;;  %v729_v34 = vld [vmem:[%s2922_s3 + $0x58] sm:$0xff]  ;;  %v1077_v39 = vld [vmem:[%s2922_s3 + $0xd0] sm:$0xff] }
  0x18   : > { %2128 = vmatprep.subr.mxu0 %v1082_v4  ;;  %2208 = vmatprep.subr.mxu1 %v733_v5  ;;  %v223_v6 = vld [vmem:[%s2494_s27] sm:$0xff]  ;;  %v224_v7 = vld [vmem:[%s2494_s27 + $0x8] sm:$0xff]  ;;  %v225_v8 = vld [vmem:[%s2494_s27 + $0x10] sm:$0xff] }
  0x19   : > { %v255_v9 = vcvt.s32.f32 %v223_v6  ;;  %v256_v10 = vcvt.s32.f32 %v224_v7  ;;  %v257_v11 = vcvt.s32.f32 %v225_v8  ;;  %v226_v12 = vld [vmem:[%s2494_s27 + $0x18] sm:$0xff]  ;;  %v227_v13 = vld [vmem:[%s2494_s27 + $0x20] sm:$0xff]  ;;  %v228_v18 = vld [vmem:[%s2494_s27 + $0x28] sm:$0xff] }
  0x1a   : > { %v258_v14 = vcvt.s32.f32 %v226_v12  ;;  %v259_v17 = vcvt.s32.f32 %v227_v13  ;;  %v229_v19 = vld [vmem:[%s2494_s27 + $0x30] sm:$0xff]  ;;  %v260_v20 = vcvt.s32.f32 %v228_v18  ;;  %v230_v24 = vld [vmem:[%s2494_s27 + $0x38] sm:$0xff]  ;;  %v231_v25 = vld [vmem:[%s2494_s27 + $0x40] sm:$0xff] }
  0x1b   : > { %2028 = vmatprep.mubr.msk.f32.mxu0 %vm289_vm1, %v255_v9  ;;  %2080 = vmatprep.mubr.msk.f32.mxu1 %vm289_vm1, %v255_v9  ;;  %v261_v23 = vcvt.s32.f32 %v229_v19  ;;  %v262_v26 = vcvt.s32.f32 %v230_v24  ;;  %v263_v29 = vcvt.s32.f32 %v231_v25  ;;  %v232_v30 = vld [vmem:[%s2494_s27 + $0x48] sm:$0xff]  ;;  %v233_v31 = vld [vmem:[%s2494_s27 + $0x50] sm:$0xff]  ;;  %v234_v36 = vld [vmem:[%s2494_s27 + $0x58] sm:$0xff] }
  0x1c   : > { %2029 = vmatmul.mubr.msk.f32.vlgmr.msra.gmra.mxu0 %vm289_vm1, %v256_v10  ;;  %2081 = vmatmul.mubr.msk.f32.vlgmr.msra.gmra.mxu1 %vm289_vm1, %v256_v10  ;;  %v264_v32 = vcvt.s32.f32 %v232_v30  ;;  %v265_v35 = vcvt.s32.f32 %v233_v31  ;;  %v235_v37 = vld [vmem:[%s2494_s27 + $0x60] sm:$0xff]  ;;  %v266_v38 = vcvt.s32.f32 %v234_v36  ;;  %v728_v40 = vld [vmem:[%s2922_s3 + $0x50] sm:$0xff]  ;;  %v236_v42 = vld [vmem:[%s2494_s27 + $0x68] sm:$0xff] }
  0x1d   : > { %2031 = vmatprep.mubr.msk.f32.mxu0 %vm289_vm1, %v257_v11  ;;  %2083 = vmatprep.mubr.msk.f32.mxu1 %vm289_vm1, %v257_v11  ;;  %v267_v41 = vcvt.s32.f32 %v235_v37  ;;  %v237_v43 = vld [vmem:[%s2494_s27 + $0x70] sm:$0xff]  ;;  %v268_v44 = vcvt.s32.f32 %v236_v42  ;;  %v1076_v45 = vld [vmem:[%s2922_s3 + $0xc8] sm:$0xff]  ;;  %v238_v48 = vld [vmem:[%s2494_s27 + $0x78] sm:$0xff] }
  0x1e   : > { %2129 = vmatpush3.msra.mxu0 %v1082_v4  ;;  %2209 = vmatpush3.msra.mxu1 %v733_v5  ;;  %v727_v46 = vld [vmem:[%s2922_s3 + $0x48] sm:$0xff]  ;;  %v269_v47 = vcvt.s32.f32 %v237_v43  ;;  %v239_v49 = vld [vmem:[%s2494_s27 + $0x80] sm:$0xff]  ;;  %v270_v50 = vcvt.s32.f32 %v238_v48  ;;  %v241_v55 = vld [vmem:[%s2494_s27 + $0x90] sm:$0xff] }
  0x1f   : > { %2130 = vmatprep.subr.mxu0 %v1081_v15  ;;  %2210 = vmatprep.subr.mxu1 %v732_v16  ;;  %v1075_v51 = vld [vmem:[%s2922_s3 + $0xc0] sm:$0xff]  ;;  %v271_v53 = vcvt.s32.f32 %v239_v49  ;;  %v240_v54 = vld [vmem:[%s2494_s27 + $0x88] sm:$0xff]  ;;  %v1074_v57 = vld [vmem:[%s2922_s3 + $0xb8] sm:$0xff]  ;;  %v273_v59 = vcvt.s32.f32 %v241_v55 }
  0x20   : > { %2032 = vmatmul.mubr.msk.f32.gmra.mxu0 %vm289_vm1, %v258_v14  ;;  %2084 = vmatmul.mubr.msk.f32.gmra.mxu1 %vm289_vm1, %v258_v14  ;;  %v726_v52 = vld [vmem:[%s2922_s3 + $0x40] sm:$0xff]  ;;  %v272_v56 = vcvt.s32.f32 %v240_v54  ;;  %v725_v58 = vld [vmem:[%s2922_s3 + $0x38] sm:$0xff]  ;;  %v1073_v63 = vld [vmem:[%s2922_s3 + $0xb0] sm:$0xff] }
  0x21   : > { %2034 = vmatprep.mubr.msk.f32.mxu0 %vm289_vm1, %v259_v17  ;;  %2086 = vmatprep.mubr.msk.f32.mxu1 %vm289_vm1, %v259_v17  ;;  %v242_v60 = vld [vmem:[%s2494_s27 + $0x98] sm:$0xff]  ;;  %v243_v61 = vld [vmem:[%s2494_s27 + $0xa0] sm:$0xff]  ;;  %v724_v0 = vld [vmem:[%s2922_s3 + $0x30] sm:$0xff] }
  0x22   : > { %2131 = vmatpush3.msra.mxu0 %v1081_v15  ;;  %2211 = vmatpush3.msra.mxu1 %v732_v16  ;;  %v274_v62 = vcvt.s32.f32 %v242_v60  ;;  %v275_v1 = vcvt.s32.f32 %v243_v61  ;;  %v244_v2 = vld [vmem:[%s2494_s27 + $0xa8] sm:$0xff]  ;;  %v245_v3 = vld [vmem:[%s2494_s27 + $0xb0] sm:$0xff]  ;;  %v246_v8 = vld [vmem:[%s2494_s27 + $0xb8] sm:$0xff] }
  0x23   : > { %2132 = vmatprep.subr.mxu0 %v1080_v21  ;;  %2212 = vmatprep.subr.mxu1 %v731_v22  ;;  %v276_v4 = vcvt.s32.f32 %v244_v2  ;;  %v1072_v5 = vld [vmem:[%s2922_s3 + $0xa8] sm:$0xff]  ;;  %v277_v7 = vcvt.s32.f32 %v245_v3  ;;  %v247_v9 = vld [vmem:[%s2494_s27 + $0xc0] sm:$0xff]  ;;  %v278_v10 = vcvt.s32.f32 %v246_v8  ;;  %v249_v15 = vld [vmem:[%s2494_s27 + $0xd0] sm:$0xff] }
  0x24   : > { %2035 = vmatmul.mubr.msk.f32.gmra.mxu0 %vm289_vm1, %v260_v20  ;;  %2087 = vmatmul.mubr.msk.f32.gmra.mxu1 %vm289_vm1, %v260_v20  ;;  %v723_v6 = vld [vmem:[%s2922_s3 + $0x28] sm:$0xff]  ;;  %v1071_v11 = vld [vmem:[%s2922_s3 + $0xa0] sm:$0xff]  ;;  %v279_v13 = vcvt.s32.f32 %v247_v9  ;;  %v1070_v17 = vld [vmem:[%s2922_s3 + $0x98] sm:$0xff]  ;;  %v281_v19 = vcvt.s32.f32 %v249_v15 }
  0x25   : > { %2037 = vmatprep.mubr.msk.f32.mxu0 %vm289_vm1, %v261_v23  ;;  %2089 = vmatprep.mubr.msk.f32.mxu1 %vm289_vm1, %v261_v23  ;;  %v722_v12 = vld [vmem:[%s2922_s3 + $0x20] sm:$0xff]  ;;  %v248_v14 = vld [vmem:[%s2494_s27 + $0xc8] sm:$0xff]  ;;  %v721_v18 = vld [vmem:[%s2922_s3 + $0x18] sm:$0xff] }
  0x26   : > { %2133 = vmatpush3.msra.mxu0 %v1080_v21  ;;  %2213 = vmatpush3.msra.mxu1 %v731_v22  ;;  %v280_v16 = vcvt.s32.f32 %v248_v14  ;;  %v250_v20 = vld [vmem:[%s2494_s27 + $0xd8] sm:$0xff]  ;;  %v251_v21 = vld [vmem:[%s2494_s27 + $0xe0] sm:$0xff]  ;;  %v1069_v23 = vld [vmem:[%s2922_s3 + $0x90] sm:$0xff] }
  0x27   : > { %2134 = vmatprep.subr.mxu0 %v1079_v27  ;;  %2214 = vmatprep.subr.mxu1 %v730_v28  ;;  %v282_v22 = vcvt.s32.f32 %v250_v20  ;;  %v720_v24 = vld [vmem:[%s2922_s3 + $0x10] sm:$0xff]  ;;  %v283_v25 = vcvt.s32.f32 %v251_v21  ;;  %v719_v30 = vld [vmem:[%s2922_s3 + $0x8] sm:$0xff] }
  0x28   : > { %2038 = vmatmul.mubr.msk.f32.gmra.mxu0 %vm289_vm1, %v262_v26  ;;  %2090 = vmatmul.mubr.msk.f32.gmra.mxu1 %vm289_vm1, %v262_v26  ;;  %v252_v26 = vld [vmem:[%s2494_s27 + $0xe8] sm:$0xff] }
  0x29   : > { %2040 = vmatprep.mubr.msk.f32.mxu0 %vm289_vm1, %v263_v29  ;;  %2092 = vmatprep.mubr.msk.f32.mxu1 %vm289_vm1, %v263_v29  ;;  %v1068_v29 = vld [vmem:[%s2922_s3 + $0x88] sm:$0xff] }
  0x2a   : > { %2135 = vmatpush3.msra.mxu0 %v1079_v27  ;;  %2215 = vmatpush3.msra.mxu1 %v730_v28  ;;  %v253_v27 = vld [vmem:[%s2494_s27 + $0xf0] sm:$0xff]  ;;  %v284_v28 = vcvt.s32.f32 %v252_v26 }
  0x2b   : > { %2136 = vmatprep.subr.mxu0 %v1078_v33  ;;  %2216 = vmatprep.subr.mxu1 %v729_v34  ;;  %v285_v31 = vcvt.s32.f32 %v253_v27 }
  0x2c   : > { %2041 = vmatmul.mubr.msk.f32.gmra.mxu0 %vm289_vm1, %v264_v32  ;;  %2093 = vmatmul.mubr.msk.f32.gmra.mxu1 %vm289_vm1, %v264_v32  ;;  %v254_v32 = vld [vmem:[%s2494_s27 + $0xf8] sm:$0xff] }
  0x2d   : > { %2043 = vmatprep.mubr.msk.f32.mxu0 %vm289_vm1, %v265_v35  ;;  %2095 = vmatprep.mubr.msk.f32.mxu1 %vm289_vm1, %v265_v35  ;;  %v718_v35 = vld [vmem:[%s2922_s3] sm:$0xff] }
  0x2e   : > { %2137 = vmatpush3.msra.mxu0 %v1078_v33  ;;  %2217 = vmatpush3.msra.mxu1 %v729_v34  ;;  %v286_v33 = vcvt.s32.f32 %v254_v32  ;;  %v1067_v34 = vld [vmem:[%s2922_s3 + $0x80] sm:$0xff] }
  0x2f   : > { %2138 = vmatprep.subr.mxu0 %v1077_v39  ;;  %2218 = vmatprep.subr.mxu1 %v728_v40 }
  0x30   : > { %2044 = vmatmul.mubr.msk.f32.gmra.mxu0 %vm289_vm1, %v266_v38  ;;  %2096 = vmatmul.mubr.msk.f32.gmra.mxu1 %vm289_vm1, %v266_v38  ;;  %v2685_v38 = vld [vmem:[%s2921_s2] ss:$0 sm:$0xff] }
  0x31   : > { %2046 = vmatprep.mubr.msk.f32.mxu0 %vm289_vm1, %v267_v41  ;;  %2098 = vmatprep.mubr.msk.f32.mxu1 %vm289_vm1, %v267_v41 }
  0x32   : > { %2139 = vmatpush3.msra.mxu0 %v1077_v39  ;;  %2219 = vmatpush3.msra.mxu1 %v728_v40  ;;  %v2690_v39 = vld [vmem:[%s2921_s2 + $0x1] ss:$0 sm:$0xff] }
  0x33   : > { %2140 = vmatprep.subr.mxu0 %v1076_v45  ;;  %2220 = vmatprep.subr.mxu1 %v727_v46 }
  0x34   : > { %2047 = vmatmul.mubr.msk.f32.gmra.mxu0 %vm289_vm1, %v268_v44  ;;  %2099 = vmatmul.mubr.msk.f32.gmra.mxu1 %vm289_vm1, %v268_v44  ;;  %v2391_v44 = vmov 1.0  }
  0x35   : > { %2049 = vmatprep.mubr.msk.f32.mxu0 %vm289_vm1, %v269_v47  ;;  %2101 = vmatprep.mubr.msk.f32.mxu1 %vm289_vm1, %v269_v47 }
  0x36   : > { %2141 = vmatpush3.msra.mxu0 %v1076_v45  ;;  %2221 = vmatpush3.msra.mxu1 %v727_v46 }
  0x37   : > { %2142 = vmatprep.subr.mxu0 %v1075_v51  ;;  %2222 = vmatprep.subr.mxu1 %v726_v52 }
  0x38   : > { %2050 = vmatmul.mubr.msk.f32.gmra.mxu0 %vm289_vm1, %v270_v50  ;;  %2102 = vmatmul.mubr.msk.f32.gmra.mxu1 %vm289_vm1, %v270_v50 }
  0x39   : > { %2052 = vmatprep.mubr.msk.f32.mxu0 %vm289_vm1, %v271_v53  ;;  %2104 = vmatprep.mubr.msk.f32.mxu1 %vm289_vm1, %v271_v53 }
  0x3a   : > { %2143 = vmatpush3.msra.mxu0 %v1075_v51  ;;  %2223 = vmatpush3.msra.mxu1 %v726_v52 }
  0x3b   : > { %2144 = vmatprep.subr.mxu0 %v1074_v57  ;;  %2224 = vmatprep.subr.mxu1 %v725_v58 }
  0x3c   : > { %2053 = vmatmul.mubr.msk.f32.gmra.mxu0 %vm289_vm1, %v272_v56  ;;  %2105 = vmatmul.mubr.msk.f32.gmra.mxu1 %vm289_vm1, %v272_v56 }
  0x3d   : > { %2055 = vmatprep.mubr.msk.f32.mxu0 %vm289_vm1, %v273_v59  ;;  %2107 = vmatprep.mubr.msk.f32.mxu1 %vm289_vm1, %v273_v59 }
  0x3e   : > { %2145 = vmatpush3.msra.mxu0 %v1074_v57  ;;  %2225 = vmatpush3.msra.mxu1 %v725_v58 }
  0x3f   : > { %2146 = vmatprep.subr.mxu0 %v1073_v63  ;;  %2226 = vmatprep.subr.mxu1 %v724_v0 }
  0x40   : > { %2056 = vmatmul.mubr.msk.f32.gmra.mxu0 %vm289_vm1, %v274_v62  ;;  %2108 = vmatmul.mubr.msk.f32.gmra.mxu1 %vm289_vm1, %v274_v62 }
  0x41   : > { %2058 = vmatprep.mubr.msk.f32.mxu0 %vm289_vm1, %v275_v1  ;;  %2110 = vmatprep.mubr.msk.f32.mxu1 %vm289_vm1, %v275_v1 }
  0x42   : > { %2147 = vmatpush3.msra.mxu0 %v1073_v63  ;;  %2227 = vmatpush3.msra.mxu1 %v724_v0 }
  0x43   : > { %2148 = vmatprep.subr.mxu0 %v1072_v5  ;;  %2228 = vmatprep.subr.mxu1 %v723_v6 }
  0x44   : > { %2059 = vmatmul.mubr.msk.f32.gmra.mxu0 %vm289_vm1, %v276_v4  ;;  %2111 = vmatmul.mubr.msk.f32.gmra.mxu1 %vm289_vm1, %v276_v4 }
  0x45   : > { %2061 = vmatprep.mubr.msk.f32.mxu0 %vm289_vm1, %v277_v7  ;;  %2113 = vmatprep.mubr.msk.f32.mxu1 %vm289_vm1, %v277_v7 }
  0x46   : > { %2149 = vmatpush3.msra.mxu0 %v1072_v5  ;;  %2229 = vmatpush3.msra.mxu1 %v723_v6 }
  0x47   : > { %2150 = vmatprep.subr.mxu0 %v1071_v11  ;;  %2230 = vmatprep.subr.mxu1 %v722_v12 }
  0x48   : > { %2062 = vmatmul.mubr.msk.f32.gmra.mxu0 %vm289_vm1, %v278_v10  ;;  %2114 = vmatmul.mubr.msk.f32.gmra.mxu1 %vm289_vm1, %v278_v10 }
  0x49   : > { %2064 = vmatprep.mubr.msk.f32.mxu0 %vm289_vm1, %v279_v13  ;;  %2116 = vmatprep.mubr.msk.f32.mxu1 %vm289_vm1, %v279_v13 }
  0x4a   : > { %2151 = vmatpush3.msra.mxu0 %v1071_v11  ;;  %2231 = vmatpush3.msra.mxu1 %v722_v12 }
  0x4b   : > { %2152 = vmatprep.subr.mxu0 %v1070_v17  ;;  %2232 = vmatprep.subr.mxu1 %v721_v18 }
  0x4c   : > { %2065 = vmatmul.mubr.msk.f32.gmra.mxu0 %vm289_vm1, %v280_v16  ;;  %2117 = vmatmul.mubr.msk.f32.gmra.mxu1 %vm289_vm1, %v280_v16 }
  0x4d   : > { %2067 = vmatprep.mubr.msk.f32.mxu0 %vm289_vm1, %v281_v19  ;;  %2119 = vmatprep.mubr.msk.f32.mxu1 %vm289_vm1, %v281_v19 }
  0x4e   : > { %2153 = vmatpush3.msra.mxu0 %v1070_v17  ;;  %2233 = vmatpush3.msra.mxu1 %v721_v18 }
  0x4f   : > { %2154 = vmatprep.subr.mxu0 %v1069_v23  ;;  %2234 = vmatprep.subr.mxu1 %v720_v24 }
  0x50   : > { %2068 = vmatmul.mubr.msk.f32.gmra.mxu0 %vm289_vm1, %v282_v22  ;;  %2120 = vmatmul.mubr.msk.f32.gmra.mxu1 %vm289_vm1, %v282_v22 }
  0x51   : > { %2070 = vmatprep.mubr.msk.f32.mxu0 %vm289_vm1, %v283_v25  ;;  %2122 = vmatprep.mubr.msk.f32.mxu1 %vm289_vm1, %v283_v25 }
  0x52   : > { %2155 = vmatpush3.msra.mxu0 %v1069_v23  ;;  %2235 = vmatpush3.msra.mxu1 %v720_v24 }
  0x53   : > { %2156 = vmatprep.subr.mxu0 %v1068_v29  ;;  %2236 = vmatprep.subr.mxu1 %v719_v30 }
  0x54   : > { %2071 = vmatmul.mubr.msk.f32.gmra.mxu0 %vm289_vm1, %v284_v28  ;;  %2123 = vmatmul.mubr.msk.f32.gmra.mxu1 %vm289_vm1, %v284_v28 }
  0x55   : > { %2073 = vmatprep.mubr.msk.f32.mxu0 %vm289_vm1, %v285_v31  ;;  %2125 = vmatprep.mubr.msk.f32.mxu1 %vm289_vm1, %v285_v31 }
  0x56   : > { %2157 = vmatpush3.msra.mxu0 %v1068_v29  ;;  %2237 = vmatpush3.msra.mxu1 %v719_v30 }
  0x57   : > { %2158 = vmatprep.subr.mxu0 %v1067_v34  ;;  %2238 = vmatprep.subr.mxu1 %v718_v35 }
  0x58   : > { %2074 = vmatmul.mubr.msk.f32.gmra.mxu0 %vm289_vm1, %v286_v33  ;;  %2126 = vmatmul.mubr.msk.f32.gmra.mxu1 %vm289_vm1, %v286_v33 }
  0x59   : > { %2159 = vmatpush3.msra.mxu0 %v1067_v34  ;;  %2239 = vmatpush3.msra.mxu1 %v718_v35 }
  0xdc   : > { %v2030_v36 = vpop.f32.mrf.mxu0  ;;  %v2082_v37 = vpop.f32.mrf.mxu1 }
  0xdd   : > { %vm623_vm4 = vcmp.eq.f32.partialorder %v2030_v36, %v2685_v38  ;;  %vm972_vm5 = vcmp.eq.f32.partialorder %v2082_v37, %v2690_v39 }
  0xde   : > { %v456_v40 = vpop.f32.mrf.mxu0  ;;  %v805_v41 = vpop.f32.mrf.mxu1 }
  0xdf   : > { %vm622_vm2 = vcmp.eq.f32.partialorder %v456_v40, %v2685_v38  ;;  %vm971_vm3 = vcmp.eq.f32.partialorder %v805_v41, %v2690_v39 }
  0xe0   : > { %v2033_v42 = vpop.f32.mrf.mxu0  ;;  %v2085_v43 = vpop.f32.mrf.mxu1  ;;  %2160 = vmatprep.mubr.msk.f32.mxu0 %vm971_vm3, %v2391_v44  ;;  %2240 = vmatprep.mubr.msk.f32.mxu1 %vm622_vm2, %v2391_v44 }
  0xe1   : > { %2161 = vmatmul.mubr.msk.f32.vlgmr.msra.gmra.mxu0 %vm972_vm5, %v2391_v44  ;;  %2241 = vmatmul.mubr.msk.f32.vlgmr.msra.gmra.mxu1 %vm623_vm4, %v2391_v44  ;;  %vm625_vm8 = vcmp.eq.f32.partialorder %v2033_v42, %v2685_v38  ;;  %vm974_vm9 = vcmp.eq.f32.partialorder %v2085_v43, %v2690_v39 }
  0xe2   : > { %v466_v45 = vpop.f32.mrf.mxu0  ;;  %v815_v46 = vpop.f32.mrf.mxu1 }
  0xe3   : > { %vm624_vm6 = vcmp.eq.f32.partialorder %v466_v45, %v2685_v38  ;;  %vm973_vm7 = vcmp.eq.f32.partialorder %v815_v46, %v2690_v39 }
  0xe4   : > { %v2036_v47 = vpop.f32.mrf.mxu0  ;;  %v2088_v48 = vpop.f32.mrf.mxu1  ;;  %2163 = vmatprep.mubr.msk.f32.mxu0 %vm973_vm7, %v2391_v44  ;;  %2243 = vmatprep.mubr.msk.f32.mxu1 %vm624_vm6, %v2391_v44 }
  0xe5   : > { %2164 = vmatmul.mubr.msk.f32.gmra.mxu0 %vm974_vm9, %v2391_v44  ;;  %2244 = vmatmul.mubr.msk.f32.gmra.mxu1 %vm625_vm8, %v2391_v44  ;;  %vm627_vm12 = vcmp.eq.f32.partialorder %v2036_v47, %v2685_v38  ;;  %vm976_vm13 = vcmp.eq.f32.partialorder %v2088_v48, %v2690_v39 }
  0xe6   : > { %v476_v49 = vpop.f32.mrf.mxu0  ;;  %v825_v50 = vpop.f32.mrf.mxu1 }
  0xe7   : > { %vm626_vm10 = vcmp.eq.f32.partialorder %v476_v49, %v2685_v38  ;;  %vm975_vm11 = vcmp.eq.f32.partialorder %v825_v50, %v2690_v39 }
  0xe8   : > { %v2039_v51 = vpop.f32.mrf.mxu0  ;;  %v2091_v52 = vpop.f32.mrf.mxu1  ;;  %2166 = vmatprep.mubr.msk.f32.mxu0 %vm975_vm11, %v2391_v44  ;;  %2246 = vmatprep.mubr.msk.f32.mxu1 %vm626_vm10, %v2391_v44 }
  0xe9   : > { %2167 = vmatmul.mubr.msk.f32.gmra.mxu0 %vm976_vm13, %v2391_v44  ;;  %2247 = vmatmul.mubr.msk.f32.gmra.mxu1 %vm627_vm12, %v2391_v44  ;;  %vm629_vm0 = vcmp.eq.f32.partialorder %v2039_v51, %v2685_v38  ;;  %vm978_vm1 = vcmp.eq.f32.partialorder %v2091_v52, %v2690_v39 }
  0xea   : > { %v486_v53 = vpop.f32.mrf.mxu0  ;;  %v835_v54 = vpop.f32.mrf.mxu1 }
  0xeb   : > { %vm628_vm14 = vcmp.eq.f32.partialorder %v486_v53, %v2685_v38  ;;  %vm977_vm15 = vcmp.eq.f32.partialorder %v835_v54, %v2690_v39 }
  0xec   : > { %v2042_v55 = vpop.f32.mrf.mxu0  ;;  %v2094_v56 = vpop.f32.mrf.mxu1  ;;  %2169 = vmatprep.mubr.msk.f32.mxu0 %vm977_vm15, %v2391_v44  ;;  %2249 = vmatprep.mubr.msk.f32.mxu1 %vm628_vm14, %v2391_v44 }
  0xed   : > { %2170 = vmatmul.mubr.msk.f32.gmra.mxu0 %vm978_vm1, %v2391_v44  ;;  %2250 = vmatmul.mubr.msk.f32.gmra.mxu1 %vm629_vm0, %v2391_v44  ;;  %vm631_vm4 = vcmp.eq.f32.partialorder %v2042_v55, %v2685_v38  ;;  %vm980_vm5 = vcmp.eq.f32.partialorder %v2094_v56, %v2690_v39 }
  0xee   : > { %v496_v57 = vpop.f32.mrf.mxu0  ;;  %v845_v58 = vpop.f32.mrf.mxu1 }
  0xef   : > { %vm630_vm2 = vcmp.eq.f32.partialorder %v496_v57, %v2685_v38  ;;  %vm979_vm3 = vcmp.eq.f32.partialorder %v845_v58, %v2690_v39 }
  0xf0   : > { %v2045_v59 = vpop.f32.mrf.mxu0  ;;  %v2097_v60 = vpop.f32.mrf.mxu1  ;;  %2172 = vmatprep.mubr.msk.f32.mxu0 %vm979_vm3, %v2391_v44  ;;  %2252 = vmatprep.mubr.msk.f32.mxu1 %vm630_vm2, %v2391_v44 }
  0xf1   : > { %2173 = vmatmul.mubr.msk.f32.gmra.mxu0 %vm980_vm5, %v2391_v44  ;;  %2253 = vmatmul.mubr.msk.f32.gmra.mxu1 %vm631_vm4, %v2391_v44  ;;  %vm633_vm8 = vcmp.eq.f32.partialorder %v2045_v59, %v2685_v38  ;;  %vm982_vm9 = vcmp.eq.f32.partialorder %v2097_v60, %v2690_v39 }
  0xf2   : > { %v506_v61 = vpop.f32.mrf.mxu0  ;;  %v855_v62 = vpop.f32.mrf.mxu1 }
  0xf3   : > { %vm632_vm6 = vcmp.eq.f32.partialorder %v506_v61, %v2685_v38  ;;  %vm981_vm7 = vcmp.eq.f32.partialorder %v855_v62, %v2690_v39 }
  0xf4   : > { %v2048_v63 = vpop.f32.mrf.mxu0  ;;  %v2100_v0 = vpop.f32.mrf.mxu1  ;;  %2175 = vmatprep.mubr.msk.f32.mxu0 %vm981_vm7, %v2391_v44  ;;  %2255 = vmatprep.mubr.msk.f32.mxu1 %vm632_vm6, %v2391_v44 }
  0xf5   : > { %2176 = vmatmul.mubr.msk.f32.gmra.mxu0 %vm982_vm9, %v2391_v44  ;;  %2256 = vmatmul.mubr.msk.f32.gmra.mxu1 %vm633_vm8, %v2391_v44  ;;  %vm635_vm12 = vcmp.eq.f32.partialorder %v2048_v63, %v2685_v38  ;;  %vm984_vm13 = vcmp.eq.f32.partialorder %v2100_v0, %v2690_v39 }
  0xf6   : > { %v516_v1 = vpop.f32.mrf.mxu0  ;;  %v865_v2 = vpop.f32.mrf.mxu1 }
  0xf7   : > { %vm634_vm10 = vcmp.eq.f32.partialorder %v516_v1, %v2685_v38  ;;  %vm983_vm11 = vcmp.eq.f32.partialorder %v865_v2, %v2690_v39 }
  0xf8   : > { %v2051_v3 = vpop.f32.mrf.mxu0  ;;  %v2103_v4 = vpop.f32.mrf.mxu1  ;;  %2178 = vmatprep.mubr.msk.f32.mxu0 %vm983_vm11, %v2391_v44  ;;  %2258 = vmatprep.mubr.msk.f32.mxu1 %vm634_vm10, %v2391_v44 }
  0xf9   : > { %2179 = vmatmul.mubr.msk.f32.gmra.mxu0 %vm984_vm13, %v2391_v44  ;;  %2259 = vmatmul.mubr.msk.f32.gmra.mxu1 %vm635_vm12, %v2391_v44  ;;  %vm637_vm0 = vcmp.eq.f32.partialorder %v2051_v3, %v2685_v38  ;;  %vm986_vm1 = vcmp.eq.f32.partialorder %v2103_v4, %v2690_v39 }
  0xfa   : > { %v526_v5 = vpop.f32.mrf.mxu0  ;;  %v875_v6 = vpop.f32.mrf.mxu1 }
  0xfb   : > { %vm636_vm14 = vcmp.eq.f32.partialorder %v526_v5, %v2685_v38  ;;  %vm985_vm15 = vcmp.eq.f32.partialorder %v875_v6, %v2690_v39 }
  0xfc   : > { %v2054_v7 = vpop.f32.mrf.mxu0  ;;  %v2106_v8 = vpop.f32.mrf.mxu1  ;;  %2181 = vmatprep.mubr.msk.f32.mxu0 %vm985_vm15, %v2391_v44  ;;  %2261 = vmatprep.mubr.msk.f32.mxu1 %vm636_vm14, %v2391_v44 }
  0xfd   : > { %2182 = vmatmul.mubr.msk.f32.gmra.mxu0 %vm986_vm1, %v2391_v44  ;;  %2262 = vmatmul.mubr.msk.f32.gmra.mxu1 %vm637_vm0, %v2391_v44  ;;  %vm639_vm4 = vcmp.eq.f32.partialorder %v2054_v7, %v2685_v38  ;;  %vm988_vm5 = vcmp.eq.f32.partialorder %v2106_v8, %v2690_v39 }
  0xfe   : > { %v536_v9 = vpop.f32.mrf.mxu0  ;;  %v885_v10 = vpop.f32.mrf.mxu1 }
  0xff   : > { %vm638_vm2 = vcmp.eq.f32.partialorder %v536_v9, %v2685_v38  ;;  %vm987_vm3 = vcmp.eq.f32.partialorder %v885_v10, %v2690_v39 }
 0x100   : > { %v2057_v11 = vpop.f32.mrf.mxu0  ;;  %v2109_v12 = vpop.f32.mrf.mxu1  ;;  %2184 = vmatprep.mubr.msk.f32.mxu0 %vm987_vm3, %v2391_v44  ;;  %2264 = vmatprep.mubr.msk.f32.mxu1 %vm638_vm2, %v2391_v44 }
 0x101   : > { %2185 = vmatmul.mubr.msk.f32.gmra.mxu0 %vm988_vm5, %v2391_v44  ;;  %2265 = vmatmul.mubr.msk.f32.gmra.mxu1 %vm639_vm4, %v2391_v44  ;;  %vm641_vm8 = vcmp.eq.f32.partialorder %v2057_v11, %v2685_v38  ;;  %vm990_vm9 = vcmp.eq.f32.partialorder %v2109_v12, %v2690_v39 }
 0x102   : > { %v546_v13 = vpop.f32.mrf.mxu0  ;;  %v895_v14 = vpop.f32.mrf.mxu1 }
 0x103   : > { %vm640_vm6 = vcmp.eq.f32.partialorder %v546_v13, %v2685_v38  ;;  %vm989_vm7 = vcmp.eq.f32.partialorder %v895_v14, %v2690_v39 }
 0x104   : > { %v2060_v15 = vpop.f32.mrf.mxu0  ;;  %v2112_v16 = vpop.f32.mrf.mxu1  ;;  %2187 = vmatprep.mubr.msk.f32.mxu0 %vm989_vm7, %v2391_v44  ;;  %2267 = vmatprep.mubr.msk.f32.mxu1 %vm640_vm6, %v2391_v44 }
 0x105   : > { %2188 = vmatmul.mubr.msk.f32.gmra.mxu0 %vm990_vm9, %v2391_v44  ;;  %2268 = vmatmul.mubr.msk.f32.gmra.mxu1 %vm641_vm8, %v2391_v44  ;;  %vm643_vm12 = vcmp.eq.f32.partialorder %v2060_v15, %v2685_v38  ;;  %vm992_vm13 = vcmp.eq.f32.partialorder %v2112_v16, %v2690_v39 }
 0x106   : > { %v556_v17 = vpop.f32.mrf.mxu0  ;;  %v905_v18 = vpop.f32.mrf.mxu1 }
 0x107   : > { %vm642_vm10 = vcmp.eq.f32.partialorder %v556_v17, %v2685_v38  ;;  %vm991_vm11 = vcmp.eq.f32.partialorder %v905_v18, %v2690_v39 }
 0x108   : > { %v2063_v19 = vpop.f32.mrf.mxu0  ;;  %v2115_v20 = vpop.f32.mrf.mxu1  ;;  %2190 = vmatprep.mubr.msk.f32.mxu0 %vm991_vm11, %v2391_v44  ;;  %2270 = vmatprep.mubr.msk.f32.mxu1 %vm642_vm10, %v2391_v44 }
 0x109   : > { %2191 = vmatmul.mubr.msk.f32.gmra.mxu0 %vm992_vm13, %v2391_v44  ;;  %2271 = vmatmul.mubr.msk.f32.gmra.mxu1 %vm643_vm12, %v2391_v44  ;;  %vm645_vm0 = vcmp.eq.f32.partialorder %v2063_v19, %v2685_v38  ;;  %vm994_vm1 = vcmp.eq.f32.partialorder %v2115_v20, %v2690_v39 }
 0x10a   : > { %v566_v21 = vpop.f32.mrf.mxu0  ;;  %v915_v22 = vpop.f32.mrf.mxu1 }
 0x10b   : > { %vm644_vm14 = vcmp.eq.f32.partialorder %v566_v21, %v2685_v38  ;;  %vm993_vm15 = vcmp.eq.f32.partialorder %v915_v22, %v2690_v39 }
 0x10c   : > { %v2066_v23 = vpop.f32.mrf.mxu0  ;;  %v2118_v24 = vpop.f32.mrf.mxu1  ;;  %2193 = vmatprep.mubr.msk.f32.mxu0 %vm993_vm15, %v2391_v44  ;;  %2273 = vmatprep.mubr.msk.f32.mxu1 %vm644_vm14, %v2391_v44 }
 0x10d   : > { %2194 = vmatmul.mubr.msk.f32.gmra.mxu0 %vm994_vm1, %v2391_v44  ;;  %2274 = vmatmul.mubr.msk.f32.gmra.mxu1 %vm645_vm0, %v2391_v44  ;;  %vm647_vm4 = vcmp.eq.f32.partialorder %v2066_v23, %v2685_v38  ;;  %vm996_vm5 = vcmp.eq.f32.partialorder %v2118_v24, %v2690_v39 }
 0x10e   : > { %v576_v25 = vpop.f32.mrf.mxu0  ;;  %v925_v26 = vpop.f32.mrf.mxu1 }
 0x10f   : > { %vm646_vm2 = vcmp.eq.f32.partialorder %v576_v25, %v2685_v38  ;;  %vm995_vm3 = vcmp.eq.f32.partialorder %v925_v26, %v2690_v39 }
 0x110   : > { %v2069_v27 = vpop.f32.mrf.mxu0  ;;  %v2121_v28 = vpop.f32.mrf.mxu1  ;;  %2196 = vmatprep.mubr.msk.f32.mxu0 %vm995_vm3, %v2391_v44  ;;  %2276 = vmatprep.mubr.msk.f32.mxu1 %vm646_vm2, %v2391_v44 }
 0x111   : > { %2197 = vmatmul.mubr.msk.f32.gmra.mxu0 %vm996_vm5, %v2391_v44  ;;  %2277 = vmatmul.mubr.msk.f32.gmra.mxu1 %vm647_vm4, %v2391_v44  ;;  %vm649_vm8 = vcmp.eq.f32.partialorder %v2069_v27, %v2685_v38  ;;  %vm998_vm9 = vcmp.eq.f32.partialorder %v2121_v28, %v2690_v39 }
 0x112   : > { %v586_v29 = vpop.f32.mrf.mxu0  ;;  %v935_v30 = vpop.f32.mrf.mxu1 }
 0x113   : > { %vm648_vm6 = vcmp.eq.f32.partialorder %v586_v29, %v2685_v38  ;;  %vm997_vm7 = vcmp.eq.f32.partialorder %v935_v30, %v2690_v39 }
 0x114   : > { %v2072_v31 = vpop.f32.mrf.mxu0  ;;  %v2124_v32 = vpop.f32.mrf.mxu1  ;;  %2199 = vmatprep.mubr.msk.f32.mxu0 %vm997_vm7, %v2391_v44  ;;  %2279 = vmatprep.mubr.msk.f32.mxu1 %vm648_vm6, %v2391_v44 }
 0x115   : > { %2200 = vmatmul.mubr.msk.f32.gmra.mxu0 %vm998_vm9, %v2391_v44  ;;  %2280 = vmatmul.mubr.msk.f32.gmra.mxu1 %vm649_vm8, %v2391_v44  ;;  %vm651_vm12 = vcmp.eq.f32.partialorder %v2072_v31, %v2685_v38  ;;  %vm1000_vm13 = vcmp.eq.f32.partialorder %v2124_v32, %v2690_v39 }
 0x116   : > { %v596_v33 = vpop.f32.mrf.mxu0  ;;  %v945_v34 = vpop.f32.mrf.mxu1 }
 0x117   : > { %vm650_vm10 = vcmp.eq.f32.partialorder %v596_v33, %v2685_v38  ;;  %vm999_vm11 = vcmp.eq.f32.partialorder %v945_v34, %v2690_v39 }
 0x118   : > { %v2075_v35 = vpop.f32.mrf.mxu0  ;;  %v2127_v36 = vpop.f32.mrf.mxu1  ;;  %2202 = vmatprep.mubr.msk.f32.mxu0 %vm999_vm11, %v2391_v44  ;;  %2282 = vmatprep.mubr.msk.f32.mxu1 %vm650_vm10, %v2391_v44 }
 0x119   : > { %2203 = vmatmul.mubr.msk.f32.gmra.mxu0 %vm1000_vm13, %v2391_v44  ;;  %2283 = vmatmul.mubr.msk.f32.gmra.mxu1 %vm651_vm12, %v2391_v44  ;;  %vm653_vm0 = vcmp.eq.f32.partialorder %v2075_v35, %v2685_v38  ;;  %vm1002_vm1 = vcmp.eq.f32.partialorder %v2127_v36, %v2690_v39 }
 0x11a   : > { %v606_v37 = vpop.f32.mrf.mxu0  ;;  %v955_v40 = vpop.f32.mrf.mxu1 }
 0x11b   : > { %vm652_vm14 = vcmp.eq.f32.partialorder %v606_v37, %v2685_v38  ;;  %vm1001_vm15 = vcmp.eq.f32.partialorder %v955_v40, %v2690_v39 }
 0x11c   : > { %2205 = vmatprep.mubr.msk.f32.mxu0 %vm1001_vm15, %v2391_v44  ;;  %2285 = vmatprep.mubr.msk.f32.mxu1 %vm652_vm14, %v2391_v44 }
 0x11d   : > { %2206 = vmatmul.mubr.msk.f32.gmra.mxu0 %vm1002_vm1, %v2391_v44  ;;  %2286 = vmatmul.mubr.msk.f32.gmra.mxu1 %vm653_vm0, %v2391_v44 }
 0x1a1   : > { %v2162_v41 = vpop.f32.mrf.mxu0  ;;  %v2242_v42 = vpop.f32.mrf.mxu1 }
 0x1a2   : > { %v1380_v43 = vadd.f32 %v2242_v42, %v2162_v41 }
 0x1a3   : > { %v1149_v45 = vpop.f32.mrf.mxu0  ;;  %v1374_v46 = vpop.f32.mrf.mxu1 }
 0x1a4   : > { %1534 = vst [vmem:[%s2823_s7 + $0x8] sm:$0xff] %v1380_v43  ;;  %v1375_v38 = vadd.f32 %v1374_v46, %v1149_v45 }
 0x1a5   : > { %v2165_v39 = vpop.f32.mrf.mxu0  ;;  %v2245_v47 = vpop.f32.mrf.mxu1 }
 0x1a6   : > { %1533 = vst [vmem:[%s2823_s7] sm:$0xff] %v1375_v38  ;;  %v1390_v44 = vadd.f32 %v2245_v47, %v2165_v39 }
 0x1a7   : > { %v1159_v48 = vpop.f32.mrf.mxu0  ;;  %v1384_v49 = vpop.f32.mrf.mxu1 }
 0x1a8   : > { %1536 = vst [vmem:[%s2823_s7 + $0x18] sm:$0xff] %v1390_v44  ;;  %v1385_v50 = vadd.f32 %v1384_v49, %v1159_v48 }
 0x1a9   : > { %v2168_v51 = vpop.f32.mrf.mxu0  ;;  %v2248_v52 = vpop.f32.mrf.mxu1 }
 0x1aa   : > { %1535 = vst [vmem:[%s2823_s7 + $0x10] sm:$0xff] %v1385_v50  ;;  %v1400_v53 = vadd.f32 %v2248_v52, %v2168_v51 }
 0x1ab   : > { %v1169_v54 = vpop.f32.mrf.mxu0  ;;  %v1394_v55 = vpop.f32.mrf.mxu1 }
 0x1ac   : > { %1538 = vst [vmem:[%s2823_s7 + $0x28] sm:$0xff] %v1400_v53  ;;  %v1395_v56 = vadd.f32 %v1394_v55, %v1169_v54 }
 0x1ad   : > { %v2171_v57 = vpop.f32.mrf.mxu0  ;;  %v2251_v58 = vpop.f32.mrf.mxu1 }
 0x1ae   : > { %1537 = vst [vmem:[%s2823_s7 + $0x20] sm:$0xff] %v1395_v56  ;;  %v1410_v59 = vadd.f32 %v2251_v58, %v2171_v57 }
 0x1af   : > { %v1179_v60 = vpop.f32.mrf.mxu0  ;;  %v1404_v61 = vpop.f32.mrf.mxu1 }
 0x1b0   : > { %1540 = vst [vmem:[%s2823_s7 + $0x38] sm:$0xff] %v1410_v59  ;;  %v1405_v62 = vadd.f32 %v1404_v61, %v1179_v60 }
 0x1b1   : > { %v2174_v63 = vpop.f32.mrf.mxu0  ;;  %v2254_v0 = vpop.f32.mrf.mxu1 }
 0x1b2   : > { %1539 = vst [vmem:[%s2823_s7 + $0x30] sm:$0xff] %v1405_v62  ;;  %v1420_v1 = vadd.f32 %v2254_v0, %v2174_v63 }
 0x1b3   : > { %v1189_v2 = vpop.f32.mrf.mxu0  ;;  %v1414_v3 = vpop.f32.mrf.mxu1 }
 0x1b4   : > { %1542 = vst [vmem:[%s2823_s7 + $0x48] sm:$0xff] %v1420_v1  ;;  %v1415_v4 = vadd.f32 %v1414_v3, %v1189_v2 }
 0x1b5   : > { %v2177_v5 = vpop.f32.mrf.mxu0  ;;  %v2257_v6 = vpop.f32.mrf.mxu1 }
 0x1b6   : > { %1541 = vst [vmem:[%s2823_s7 + $0x40] sm:$0xff] %v1415_v4  ;;  %v1430_v7 = vadd.f32 %v2257_v6, %v2177_v5 }
 0x1b7   : > { %v1199_v8 = vpop.f32.mrf.mxu0  ;;  %v1424_v9 = vpop.f32.mrf.mxu1 }
 0x1b8   : > { %1544 = vst [vmem:[%s2823_s7 + $0x58] sm:$0xff] %v1430_v7  ;;  %v1425_v10 = vadd.f32 %v1424_v9, %v1199_v8 }
 0x1b9   : > { %v2180_v11 = vpop.f32.mrf.mxu0  ;;  %v2260_v12 = vpop.f32.mrf.mxu1 }
 0x1ba   : > { %1543 = vst [vmem:[%s2823_s7 + $0x50] sm:$0xff] %v1425_v10  ;;  %v1440_v13 = vadd.f32 %v2260_v12, %v2180_v11 }
 0x1bb   : > { %v1209_v14 = vpop.f32.mrf.mxu0  ;;  %v1434_v15 = vpop.f32.mrf.mxu1 }
 0x1bc   : > { %1546 = vst [vmem:[%s2823_s7 + $0x68] sm:$0xff] %v1440_v13  ;;  %v1435_v16 = vadd.f32 %v1434_v15, %v1209_v14 }
 0x1bd   : > { %v2183_v17 = vpop.f32.mrf.mxu0  ;;  %v2263_v18 = vpop.f32.mrf.mxu1 }
 0x1be   : > { %1545 = vst [vmem:[%s2823_s7 + $0x60] sm:$0xff] %v1435_v16  ;;  %v1450_v19 = vadd.f32 %v2263_v18, %v2183_v17 }
 0x1bf   : > { %v1219_v20 = vpop.f32.mrf.mxu0  ;;  %v1444_v21 = vpop.f32.mrf.mxu1 }
 0x1c0   : > { %1548 = vst [vmem:[%s2823_s7 + $0x78] sm:$0xff] %v1450_v19  ;;  %v1445_v22 = vadd.f32 %v1444_v21, %v1219_v20 }
 0x1c1   : > { %v2186_v23 = vpop.f32.mrf.mxu0  ;;  %v2266_v24 = vpop.f32.mrf.mxu1 }
 0x1c2   : > { %1547 = vst [vmem:[%s2823_s7 + $0x70] sm:$0xff] %v1445_v22  ;;  %v1460_v25 = vadd.f32 %v2266_v24, %v2186_v23 }
 0x1c3   : > { %v1229_v26 = vpop.f32.mrf.mxu0  ;;  %v1454_v27 = vpop.f32.mrf.mxu1 }
 0x1c4   : > { %1550 = vst [vmem:[%s2823_s7 + $0x88] sm:$0xff] %v1460_v25  ;;  %v1455_v28 = vadd.f32 %v1454_v27, %v1229_v26 }
 0x1c5   : > { %v2189_v29 = vpop.f32.mrf.mxu0  ;;  %v2269_v30 = vpop.f32.mrf.mxu1 }
 0x1c6   : > { %1549 = vst [vmem:[%s2823_s7 + $0x80] sm:$0xff] %v1455_v28  ;;  %v1470_v31 = vadd.f32 %v2269_v30, %v2189_v29 }
 0x1c7   : > { %v1239_v32 = vpop.f32.mrf.mxu0  ;;  %v1464_v33 = vpop.f32.mrf.mxu1 }
 0x1c8   : > { %1552 = vst [vmem:[%s2823_s7 + $0x98] sm:$0xff] %v1470_v31  ;;  %v1465_v34 = vadd.f32 %v1464_v33, %v1239_v32 }
 0x1c9   : > { %v2192_v35 = vpop.f32.mrf.mxu0  ;;  %v2272_v36 = vpop.f32.mrf.mxu1 }
 0x1ca   : > { %1551 = vst [vmem:[%s2823_s7 + $0x90] sm:$0xff] %v1465_v34  ;;  %v1480_v37 = vadd.f32 %v2272_v36, %v2192_v35 }
 0x1cb   : > { %v1249_v40 = vpop.f32.mrf.mxu0  ;;  %v1474_v41 = vpop.f32.mrf.mxu1 }
 0x1cc   : > { %1554 = vst [vmem:[%s2823_s7 + $0xa8] sm:$0xff] %v1480_v37  ;;  %v1475_v42 = vadd.f32 %v1474_v41, %v1249_v40 }
 0x1cd   : > { %v2195_v43 = vpop.f32.mrf.mxu0  ;;  %v2275_v45 = vpop.f32.mrf.mxu1 }
 0x1ce   : > { %1553 = vst [vmem:[%s2823_s7 + $0xa0] sm:$0xff] %v1475_v42  ;;  %v1490_v46 = vadd.f32 %v2275_v45, %v2195_v43 }
 0x1cf   : > { %v1259_v38 = vpop.f32.mrf.mxu0  ;;  %v1484_v39 = vpop.f32.mrf.mxu1 }
 0x1d0   : > { %1556 = vst [vmem:[%s2823_s7 + $0xb8] sm:$0xff] %v1490_v46  ;;  %v1485_v47 = vadd.f32 %v1484_v39, %v1259_v38 }
 0x1d1   : > { %v2198_v44 = vpop.f32.mrf.mxu0  ;;  %v2278_v48 = vpop.f32.mrf.mxu1 }
 0x1d2   : > { %1555 = vst [vmem:[%s2823_s7 + $0xb0] sm:$0xff] %v1485_v47  ;;  %v1500_v49 = vadd.f32 %v2278_v48, %v2198_v44 }
 0x1d3   : > { %v1269_v50 = vpop.f32.mrf.mxu0  ;;  %v1494_v51 = vpop.f32.mrf.mxu1 }
 0x1d4   : > { %1558 = vst [vmem:[%s2823_s7 + $0xc8] sm:$0xff] %v1500_v49  ;;  %v1495_v52 = vadd.f32 %v1494_v51, %v1269_v50 }
 0x1d5   : > { %v2201_v53 = vpop.f32.mrf.mxu0  ;;  %v2281_v54 = vpop.f32.mrf.mxu1 }
 0x1d6   : > { %1557 = vst [vmem:[%s2823_s7 + $0xc0] sm:$0xff] %v1495_v52  ;;  %v1510_v55 = vadd.f32 %v2281_v54, %v2201_v53 }
 0x1d7   : > { %v1279_v56 = vpop.f32.mrf.mxu0  ;;  %v1504_v57 = vpop.f32.mrf.mxu1 }
 0x1d8   : > { %1560 = vst [vmem:[%s2823_s7 + $0xd8] sm:$0xff] %v1510_v55  ;;  %v1505_v58 = vadd.f32 %v1504_v57, %v1279_v56 }
 0x1d9   : > { %v2204_v59 = vpop.f32.mrf.mxu0  ;;  %v2284_v60 = vpop.f32.mrf.mxu1 }
 0x1da   : > { %1559 = vst [vmem:[%s2823_s7 + $0xd0] sm:$0xff] %v1505_v58  ;;  %v1520_v61 = vadd.f32 %v2284_v60, %v2204_v59 }
 0x1db   : > { %v1289_v62 = vpop.f32.mrf.mxu0  ;;  %v1514_v63 = vpop.f32.mrf.mxu1 }
 0x1dc   : > { %1562 = vst [vmem:[%s2823_s7 + $0xe8] sm:$0xff] %v1520_v61  ;;  %v1515_v0 = vadd.f32 %v1514_v63, %v1289_v62 }
 0x1dd   : > { %v2207_v1 = vpop.f32.mrf.mxu0  ;;  %v2287_v2 = vpop.f32.mrf.mxu1 }
 0x1de   : > { %1561 = vst [vmem:[%s2823_s7 + $0xe0] sm:$0xff] %v1515_v0  ;;  %v1530_v3 = vadd.f32 %v2287_v2, %v2207_v1  ;;  %1572 = sbr.rel (!%p2458_p5) target bundleno = 510 (0x1fe), region = 40 }
 0x1df   : > { %v1299_v4 = vpop.f32.mrf.mxu0  ;;  %v1524_v5 = vpop.f32.mrf.mxu1 }
 0x1e0   : > { %1564 = vst [vmem:[%s2823_s7 + $0xf8] sm:$0xff] %v1530_v3  ;;  %v1525_v6 = vadd.f32 %v1524_v5, %v1299_v4 }
 0x1e2   : > { %1563 = vst [vmem:[%s2823_s7 + $0xf0] sm:$0xff] %v1525_v6 }
 0x1e3   : > { %s2931_s10 = smov (!%p1575_p11, %s1574_s10), 32 }
 0x1e4   : > { %s2864_s11 = sshll.u32 %s2931_s10, 7 }
 0x1e5   : > { %s1579_s12 = ssub.s32 4096, %s2864_s11 }
 0x1e6   : > { %1580 = vsyncadd %s2859_s8, %s1579_s12  ;;  %p1853_p12 = scmp.ne.s32.totalorder %s2864_s11, 0  ;;  %s1859_s13 = sshll.u32 %s2441_s19, 12 }
 0x1e7   : > { %s2873_s14 = scalar_lea.hbm %s2923_s4, %s1859_s13  ;;  %s1585_s9 = sshll.u32 %s2823_s7, 4  ;;  %s2876_s9 = int_to_ptr.vmem [resolvable:$true] %s1585_s9 }
 0x1e8   : > { %s2329_s20 = scalar_lea.vmem %s2876_s9, %s2864_s11  ;;  %s2392_s22 = smov [#allocation2]  }
 0x1e9   : > { %p2330_p13 = scmp.ne.s32.totalorder %s2876_s9, %s2329_s20  ;;  %s2333_s23 = sshll.u32 %s2392_s22, 4  ;;  %s2334_s23 = int_to_ptr.vmem [resolvable:$false] %s2333_s23 }
 0x1ea   : > { %s2335_s19 = scalar_lea.vmem %s2334_s23, 8192  ;;  %p2336_p2 = scmp.lt.s32.totalorder %s2876_s9, %s2334_s23 }
 0x1eb   : > { %p2331_p0 = pnand %p2330_p13, %p1853_p12  ;;  %p2337_p3 = scmp.lt.s32.totalorder %s2335_s19, %s2329_s20 }
 0x1ed   : > { %p2332_p1 = pneg %p2331_p0  ;;  %p2338_p4 = por %p2337_p3, %p2336_p2 }
 0x1ef   : > { %p2339_p5 = pnand %p2338_p4, %p2332_p1 }
 0x1f1   : > { %2342 = shalt.err (!%p2339_p5)
}
 0x1f2   : > { %s2343_s28 = scalar_lea.hbm %s2873_s14, %s2864_s11  ;;  %s2347_s5 = scalar_lea.hbm %s2923_s4, 16000 }
 0x1f3   : > { %p2344_p7 = scmp.ne.s32.totalorder %s2873_s14, %s2343_s28  ;;  %p2348_p10 = scmp.lt.s32.totalorder %s2873_s14, %s2923_s4 }
 0x1f4   : > { %p2349_p11 = scmp.lt.s32.totalorder %s2347_s5, %s2343_s28 }
 0x1f5   : > { %p2345_p8 = pnand %p2344_p7, %p1853_p12 }
 0x1f6   : > { %p2350_p13 = por %p2349_p11, %p2348_p10 }
 0x1f7   : > { %p2346_p9 = pneg %p2345_p8 }
 0x1f9   : > { %p2351_p0 = pnand %p2350_p13, %p2346_p9 }
 0x1fb   : > { %2354 = shalt.err (!%p2351_p0)
}
 0x1fc   : > { %s2393_s10 = smov 128   ;;  %s2394_s12 = smov 8  }
 0x1fd   : > { %1591 = dma.vmem_to_hbm [thread:$0]  (%p1853_p12), %s2876_s9, %s2864_s11, %s2873_s14, %s2859_s8, %s2393_s10, %s2393_s10, %s2394_s12  }
 0x1fe PF: > { %p2293_p1 = scmp.ge.s32.totalorder %s2389_s18, 2  ;;  %s1600_s13 = sand.u32 1, %s2377_s15  }
 0x1ff   : > { %s1601_s27 = scalar_lea.sflag [#allocation3], %s1600_s13 }
 0x200   : > { %p2290_p2 = pnand %p2293_p1, %p2462_p6 }
 0x202   : > { %p2291_p3 = pneg %p2290_p2 }
 0x204   : > { %2372 = dma.done.wait (%p2291_p3), %s1601_s27, 4096  }
 0x205   : > { %2374 = vsyncadd (%p2291_p3), %s1601_s27, 4294963200  ;;  %p14_p4 = scmp.ge.s32.totalorder %s2445_s21, 6   ;;  %s2926_s15 = smov %s2381_s16 }
 0x206   : > { %s2927_s16 = smov %s2385_s17  ;;  %s2928_s17 = smov %s2456_s24 }
 0x207   : > { %s2929_s18 = smov %s2445_s21  ;;  %16 = sbr.rel (!%p14_p4) target bundleno = 3 (0x3), region = 71 }
 0x20c   :  { %1606 = vsyncpa [#allocation3], 1 }
 0x20d   :  { %1608 = vsyncpa [#allocation3 + $0x1], 1 }

</bundles_post_ra>
